<compile_context>
chip_gen: v7x
topology: tpu7x:2x2x1
jax: 0.10.0
libtpu: 0.0.40
codegen_flags: <defaults>
</compile_context>

<pallas_src>
import functools

import jax
import jax.numpy as jnp
from jax import lax
from jax.experimental import pallas as pl
from jax.experimental.pallas import tpu as pltpu


def _round_up(x: int, m: int) -> int:
    return (x + m - 1) // m * m


def _vmem_capacity_bytes() -> int:
    """Per-core VMEM capacity (v5e/v6e: 128 MiB, v7x: 64 MiB). Conservative fallback."""
    try:
        cap = int(getattr(pltpu.get_tpu_info(), "vmem_capacity_bytes", 0) or 0)
        if cap > 0:
            return cap
    except Exception:
        pass
    return 64 * 1024 * 1024


def _heads_per_group(head: int, head_dim: int) -> int:
    """Largest divisor of `head` whose group width (hpg * head_dim) fits 128 lanes."""
    hpg = min(head, max(1, 128 // max(head_dim, 1)))
    while hpg > 1 and head % hpg:
        hpg -= 1
    return hpg


def _plan(B, N, D, dtype, q_tile_arg, vmem_cap):
    """Pick (q_tile, n_pad, grid_q, kv_cached, vmem_limit) from shapes + VMEM size."""
    it = jnp.dtype(dtype).itemsize
    n8 = _round_up(max(N, 1), 8)
    # Bigger tiles on 128 MiB parts (v5e/v6e); tighter cap on v7x's 64 MiB.
    cap_tile = 256 if vmem_cap <= (64 << 20) else 512

    if q_tile_arg is None:
        q_tile = min(n8, cap_tile)
    else:
        q_tile = min(_round_up(q_tile_arg, 8), n8)

    def tiles(qt):
        npad = _round_up(N, qt)
        return npad, npad // qt

    n_pad, grid_q = tiles(q_tile)

    # v7x occupancy: guarantee >= 2 parallel grid steps when the caller didn't
    # force a tile size (otherwise one TensorCore idles for B == 1 ViT calls).
    if q_tile_arg is None and B * grid_q < 2 and n8 >= 16:
        q_tile = _round_up((n8 + 1) // 2, 8)
        n_pad, grid_q = tiles(q_tile)

    def cached(gq):
        # Reuse K/V across query tiles, unless that would idle a TensorCore for
        # cheap single-batch calls with only a few tiles (occupancy > recompute).
        return gq >= 2 and not (B == 1 and gq <= 4)

    def est(qt, npad, kvc):
        b = 2 * npad * D * it                     # z block (double-buffered)
        b += 2 * 3 * D * D * it                   # fused Wqkv
        b += 2 * D * D * it + 2 * D * it          # Wo + bias
        b += 2 * qt * D * it                      # output block
        b += qt * D * it                          # ctx scratch
        if kvc:
            b += npad * 2 * D * it                # resident K/V scratch
        b += npad * 3 * D * (4 + it)              # projection temporaries (f32 + cast)
        b += 6 * qt * npad * 4                    # softmax temporaries
        return b

    budget = int(vmem_cap * 0.80)
    while q_tile > 64 and est(q_tile, n_pad, cached(grid_q)) > budget:
        q_tile = max(64, _round_up(q_tile // 2, 8))
        n_pad, grid_q = tiles(q_tile)

    kv_cached = cached(grid_q)
    need = est(q_tile, n_pad, kv_cached)
    vmem_limit = max(16 << 20,
                     min(int(need * 1.3) + (4 << 20), int(vmem_cap) - (8 << 20)))
    return q_tile, n_pad, grid_q, kv_cached, vmem_limit


def mhsa_kernel(z_ref, wqkv_ref, wo_ref, bo_ref, o_ref, ctx_ref, kv_ref, *,
                head: int, head_dim: int, q_tile: int, n_real: int,
                heads_per_group: int):
    """One (batch, query-tile) grid step.

    z_ref   : (n_pad, D)    all (padded) tokens of this batch element
    wqkv_ref: (D, 3D)       fused [Wq*scale | Wk | Wv]^T
    wo_ref  : (D, D)        Wo^T
    bo_ref  : (1, D)        Wo bias
    o_ref   : (q_tile, D)   output block
    ctx_ref : (q_tile, D)   per-head contexts, operand dtype (lane-dense stores)
    kv_ref  : (n_pad, 2D)   persistent K/V scratch (None when not cached)
    """
    D = head * head_dim
    n_pad = z_ref.shape[0]
    cdt = z_ref.dtype                        # MXU feed dtype (bf16 or f32)
    kv_cached = kv_ref is not None
    single_tile = (q_tile == n_pad)

    qi = pl.program_id(1)
    q_start = pl.multiple_of(qi * q_tile, 8)

    if single_tile:
        # One fused QKV matmul (wide 3D RHS keeps the MXU fed).
        qkv = jnp.dot(z_ref[...], wqkv_ref[...],
                      preferred_element_type=jnp.float32).astype(cdt)
        q = qkv[:, :D]
        get_k = lambda lo, hi: qkv[:, D + lo:D + hi]
        get_v = lambda lo, hi: qkv[:, 2 * D + lo:2 * D + hi]
    elif kv_cached:
        # Project K/V once per batch element; reuse for every query tile.
        @pl.when(qi == 0)
        def _():
            kv_ref[...] = jnp.dot(z_ref[...], wqkv_ref[:, D:],
                                  preferred_element_type=jnp.float32).astype(cdt)

        z_q = z_ref[pl.ds(q_start, q_tile), :]
        q = jnp.dot(z_q, wqkv_ref[:, :D],
                    preferred_element_type=jnp.float32).astype(cdt)
        get_k = lambda lo, hi: kv_ref[:, lo:hi]
        get_v = lambda lo, hi: kv_ref[:, D + lo:D + hi]
    else:
        # Few-tile single-batch path: recompute K/V per tile so the qi axis can
        # stay "parallel" (keeps both v7x TensorCores busy).
        z_q = z_ref[pl.ds(q_start, q_tile), :]
        q = jnp.dot(z_q, wqkv_ref[:, :D],
                    preferred_element_type=jnp.float32).astype(cdt)
        kv = jnp.dot(z_ref[...], wqkv_ref[:, D:],
                     preferred_element_type=jnp.float32).astype(cdt)
        get_k = lambda lo, hi: kv[:, lo:hi]
        get_v = lambda lo, hi: kv[:, D + lo:D + hi]

    if n_pad > n_real:   # static check: mask padded key tokens
        key_valid = lax.broadcasted_iota(jnp.int32, (q_tile, n_pad), 1) < n_real
    else:
        key_valid = None

    # Heads in lane-aligned groups: one lane-dense <=128-wide store per group.
    # (1/sqrt(head_dim) is already folded into the Q weight columns.)
    gw = heads_per_group * head_dim
    for g in range(head // heads_per_group):
        pieces = []
        for j in range(heads_per_group):
            h = g * heads_per_group + j
            lo, hi = h * head_dim, (h + 1) * head_dim
            q_h = q[:, lo:hi]
            k_h = get_k(lo, hi)
            v_h = get_v(lo, hi)
            # Contract on head_dim directly (no k_h.T materialization).
            s = lax.dot_general(q_h, k_h, (((1,), (1,)), ((), ())),
                                preferred_element_type=jnp.float32)  # (tq, n_pad)
            if key_valid is not None:
                s = jnp.where(key_valid, s, -1e30)
            m = jnp.max(s, axis=-1, keepdims=True)
            e = jnp.exp(s - m)
            denom = jnp.sum(e, axis=-1, keepdims=True)
            p = e * pl.reciprocal(denom, approx=True)      # softmax (EUP reciprocal)
            ctx_h = jnp.dot(p.astype(cdt), v_h,
                            preferred_element_type=jnp.float32)
            pieces.append(ctx_h.astype(cdt))
        grp = pieces[0] if len(pieces) == 1 else jnp.concatenate(pieces, axis=-1)
        ctx_ref[:, g * gw:(g + 1) * gw] = grp

    out = jnp.dot(ctx_ref[...], wo_ref[...], preferred_element_type=jnp.float32)
    out = out + bo_ref[...].astype(jnp.float32)
    o_ref[...] = out.astype(o_ref.dtype)


def prepare_mhsa_params(wq_t, wk_t, wv_t, wo_t, bo, *, head: int, dtype=None):
    """Build fused parameters ONCE (parameter-prep time, not per forward call).

    Returns (wqkv, wo, bo2) with the 1/sqrt(head_dim) attention scale folded
    into the Q columns of the fused (D, 3D) weight.
    """
    D = wq_t.shape[0]
    assert D % head == 0, "emb_dim must be divisible by head"
    head_dim = D // head
    dtype = wq_t.dtype if dtype is None else dtype
    scale = 1.0 / (head_dim ** 0.5)
    wqkv = jnp.concatenate(
        [wq_t.astype(jnp.float32) * scale,
         wk_t.astype(jnp.float32),
         wv_t.astype(jnp.float32)], axis=1).astype(dtype)
    wo = wo_t.astype(dtype)
    bo2 = bo.reshape(1, D).astype(dtype)
    return wqkv, wo, bo2


def mhsa_fused(z, wqkv, wo, bo2, *, head: int, q_tile=None):
    """MHSA forward from pre-fused parameters (see prepare_mhsa_params)."""
    B, N, D = z.shape
    assert wqkv.shape == (D, 3 * D)
    assert D % head == 0
    head_dim = D // head
    dtype = z.dtype

    vmem_cap = _vmem_capacity_bytes()
    q_tile, n_pad, grid_q, kv_cached, vmem_limit = _plan(B, N, D, dtype, q_tile,
                                                         vmem_cap)
    z_p = z if n_pad == N else jnp.pad(z, ((0, 0), (0, n_pad - N), (0, 0)))

    itemsize = jnp.dtype(dtype).itemsize
    kv_reps = 1 if (kv_cached or grid_q == 1) else grid_q
    flops = B * (2 * n_pad * D * D                    # Q projection
                 + 2 * n_pad * D * 2 * D * kv_reps    # K/V projection (no double count)
                 + 4 * n_pad * n_pad * D              # QK^T + attn @ V
                 + 2 * n_pad * D * D)                 # output projection
    cost = pl.CostEstimate(
        flops=int(flops),
        transcendentals=int(B * head * n_pad * n_pad),
        bytes_accessed=int((2 * B * n_pad * D + wqkv.size + wo.size + bo2.size)
                           * itemsize),
    )

    scratch = [pltpu.VMEM((q_tile, D), dtype)]          # per-head contexts
    if kv_cached:
        scratch.append(pltpu.VMEM((n_pad, 2 * D), dtype))   # resident K/V

    body = functools.partial(
        mhsa_kernel, head=head, head_dim=head_dim, q_tile=q_tile, n_real=N,
        heads_per_group=_heads_per_group(head, head_dim))
    if kv_cached:
        kernel = body                                    # 7 refs incl. kv scratch
    else:
        kernel = lambda *refs: body(*refs, None)         # no kv scratch

    qi_sem = "arbitrary" if (kv_cached or grid_q == 1) else "parallel"
    out = pl.pallas_call(
        kernel,
        out_shape=jax.ShapeDtypeStruct((B, n_pad, D), dtype),
        grid=(B, grid_q),
        in_specs=[
            pl.BlockSpec((None, n_pad, D), lambda b, qi: (b, 0, 0)),  # z (all tokens)
            pl.BlockSpec((D, 3 * D), lambda b, qi: (0, 0)),           # fused Wqkv^T
            pl.BlockSpec((D, D), lambda b, qi: (0, 0)),               # Wo^T
            pl.BlockSpec((1, D), lambda b, qi: (0, 0)),               # Wo bias
        ],
        out_specs=pl.BlockSpec((None, q_tile, D), lambda b, qi: (b, qi, 0)),
        scratch_shapes=scratch,
        compiler_params=pltpu.CompilerParams(
            dimension_semantics=("parallel", qi_sem),
            vmem_limit_bytes=int(vmem_limit)),
        cost_estimate=cost,
    )(z_p, wqkv, wo, bo2)
    return out if n_pad == N else out[:, :N, :]


def mhsa(z, wq_t, wk_t, wv_t, wo_t, bo, *, head: int, q_tile=None):
    """Convenience wrapper: fuse params (normally hoisted to prep time) + run."""
    params = prepare_mhsa_params(wq_t, wk_t, wv_t, wo_t, bo, head=head,
                                 dtype=z.dtype)
    return mhsa_fused(z, *params, head=head, q_tile=q_tile)


def mhsa_reference(z, wq_t, wk_t, wv_t, wo_t, bo, *, head: int):
    """Pure-JAX reference mirroring the PyTorch forward (dropout = identity)."""
    B, N, D = z.shape
    hd = D // head
    q = (z @ wq_t).reshape(B, N, head, hd).transpose(0, 2, 1, 3)
    k = (z @ wk_t).reshape(B, N, head, hd).transpose(0, 2, 1, 3)
    v = (z @ wv_t).reshape(B, N, head, hd).transpose(0, 2, 1, 3)
    dots = jnp.einsum("bhqd,bhkd->bhqk", q, k) / (hd ** 0.5)
    attn = jax.nn.softmax(dots, axis=-1)
    out = jnp.einsum("bhqk,bhkd->bhqd", attn, v)
    out = out.transpose(0, 2, 1, 3).reshape(B, N, D)
    return out @ wo_t + bo


if __name__ == "__main__":
    # Small shapes consistent with the module: emb_dim divisible by head.
    B, N, D, H = 2, 8, 32, 4

    key = jax.random.PRNGKey(0)
    kz, kq, kk, kv, ko, kb = jax.random.split(key, 6)
    z = jax.random.normal(kz, (B, N, D), dtype=jnp.float32)
    # PyTorch nn.Linear stores weight as (out, in); we build (in, out) directly.
    s = 1.0 / (D ** 0.5)
    wq_t = jax.random.uniform(kq, (D, D), jnp.float32, -s, s)
    wk_t = jax.random.uniform(kk, (D, D), jnp.float32, -s, s)
    wv_t = jax.random.uniform(kv, (D, D), jnp.float32, -s, s)
    wo_t = jax.random.uniform(ko, (D, D), jnp.float32, -s, s)
    bo = jax.random.uniform(kb, (D,), jnp.float32, -s, s)

    # 1) f32 operands, single query tile (approx softmax reciprocal is the only
    #    approximation).
    out = jax.block_until_ready(mhsa(z, wq_t, wk_t, wv_t, wo_t, bo, head=H))
    ref = mhsa_reference(z, wq_t, wk_t, wv_t, wo_t, bo, head=H)
    assert out.shape == (B, N, D)
    assert jnp.allclose(out, ref, atol=1e-2, rtol=1e-2), "f32 mismatch vs reference"

    # 2) bf16 operands (native MXU path; production path on v5e); compare against
    #    f32 math on the same bf16-rounded inputs with a looser tolerance.
    bf = lambda a: a.astype(jnp.bfloat16)
    out_bf = jax.block_until_ready(
        mhsa(bf(z), bf(wq_t), bf(wk_t), bf(wv_t), bf(wo_t), bf(bo), head=H))
    up = lambda a: bf(a).astype(jnp.float32)
    ref_bf = mhsa_reference(up(z), up(wq_t), up(wk_t), up(wv_t), up(wo_t),
                            up(bo), head=H)
    assert out_bf.dtype == jnp.bfloat16
    assert jnp.allclose(out_bf.astype(jnp.float32), ref_bf,
                        atol=5e-2, rtol=5e-2), "bf16 mismatch vs reference"

    # 3) Odd token count + forced query tiling with B>=2: exercises token padding,
    #    padded-key masking and the K/V-cached ("arbitrary" qi) blocked path.
    N2 = 13
    z2 = jax.random.normal(kz, (B, N2, D), dtype=jnp.float32)
    out2 = jax.block_until_ready(
        mhsa(z2, wq_t, wk_t, wv_t, wo_t, bo, head=H, q_tile=8))
    ref2 = mhsa_reference(z2, wq_t, wk_t, wv_t, wo_t, bo, head=H)
    assert out2.shape == (B, N2, D)
    assert jnp.allclose(out2, ref2, atol=1e-2, rtol=1e-2), "kv-cached mismatch vs reference"

    # 4) Single-batch occupancy path: default tiling splits the query axis into
    #    >= 2 "parallel" tiles (both v7x TensorCores busy), K/V recomputed per tile.
    N3 = 24
    z3 = jax.random.normal(kz, (1, N3, D), dtype=jnp.float32)
    out3 = jax.block_until_ready(mhsa(z3, wq_t, wk_t, wv_t, wo_t, bo, head=H))
    ref3 = mhsa_reference(z3, wq_t, wk_t, wv_t, wo_t, bo, head=H)
    assert out3.shape == (1, N3, D)
    assert jnp.allclose(out3, ref3, atol=1e-2, rtol=1e-2), "B=1 split mismatch vs reference"

    print("KERNEL_OK")
</pallas_src>

<mosaic_0001>
module attributes {stable_mosaic.version = 11 : i64} {
  func.func @_lambda_(%arg0: i32, %arg1: i32, %arg2: memref<1x8x32xf32, #tpu.memory_space<vmem>>, %arg3: memref<32x96xf32, #tpu.memory_space<vmem>>, %arg4: memref<32x32xf32, #tpu.memory_space<vmem>>, %arg5: memref<1x32xf32, #tpu.memory_space<vmem>>, %arg6: memref<1x8x32xf32, #tpu.memory_space<vmem>>, %arg7: memref<8x32xf32, #tpu.memory_space<vmem>>) attributes {dimension_semantics = [#tpu.dimension_semantics<parallel>, #tpu.dimension_semantics<arbitrary>], iteration_bounds = array<i64: 2, 1>, scalar_prefetch = 0 : i64, scratch_operands = 1 : i64, tpu.core_type = #tpu.core_type<tc>, window_params = [{transform_indices = @transform_0, window_bounds = array<i64: 1, 8, 32>}, {pipeline_mode = #tpu.pipeline_mode<synchronous>, transform_indices = @transform_1, window_bounds = array<i64: 32, 96>}, {pipeline_mode = #tpu.pipeline_mode<synchronous>, transform_indices = @transform_2, window_bounds = array<i64: 32, 32>}, {pipeline_mode = #tpu.pipeline_mode<synchronous>, transform_indices = @transform_3, window_bounds = array<i64: 1, 32>}, {transform_indices = @transform_4, window_bounds = array<i64: 1, 8, 32>}]} {
    %c0 = arith.constant 0 : index
    %c0_0 = arith.constant 0 : index
    %c0_1 = arith.constant 0 : index
    %0 = vector.load %arg2[%c0, %c0_0, %c0_1] : memref<1x8x32xf32, #tpu.memory_space<vmem>>, vector<1x8x32xf32>
    %1 = vector.shape_cast %0 : vector<1x8x32xf32> to vector<8x32xf32>
    %c0_2 = arith.constant 0 : index
    %c0_3 = arith.constant 0 : index
    %2 = vector.load %arg3[%c0_2, %c0_3] : memref<32x96xf32, #tpu.memory_space<vmem>>, vector<32x96xf32>
    %cst = arith.constant dense<0.000000e+00> : vector<8x96xf32>
    %3 = tpu.matmul %1, %2, %cst {dimension_numbers = #tpu.dot_dimension_numbers<[1], [0], [0], [1], [0, 0, 1, 1], [], []>} : vector<8x32xf32>, vector<32x96xf32>, vector<8x96xf32> -> vector<8x96xf32>
    %4 = vector.extract_strided_slice %3 {offsets = [0, 0], sizes = [8, 32], strides = [1, 1]} : vector<8x96xf32> to vector<8x32xf32>
    %5 = vector.extract_strided_slice %4 {offsets = [0, 0], sizes = [8, 8], strides = [1, 1]} : vector<8x32xf32> to vector<8x8xf32>
    %6 = vector.extract_strided_slice %3 {offsets = [0, 32], sizes = [8, 8], strides = [1, 1]} : vector<8x96xf32> to vector<8x8xf32>
    %7 = vector.extract_strided_slice %3 {offsets = [0, 64], sizes = [8, 8], strides = [1, 1]} : vector<8x96xf32> to vector<8x8xf32>
    %cst_4 = arith.constant dense<0.000000e+00> : vector<8x8xf32>
    %8 = tpu.matmul %5, %6, %cst_4 {dimension_numbers = #tpu.dot_dimension_numbers<[1], [1], [0], [0], [0, 0, 1, 0], [], []>} : vector<8x8xf32>, vector<8x8xf32>, vector<8x8xf32> -> vector<8x8xf32>
    %cst_5 = arith.constant dense<0xFF800000> : vector<8xf32>
    %9 = vector.multi_reduction <maximumf>, %8, %cst_5 [1] : vector<8x8xf32> to vector<8xf32>
    %10 = vector.shape_cast %9 : vector<8xf32> to vector<8x1xf32>
    %11 = vector.broadcast %10 : vector<8x1xf32> to vector<8x8xf32>
    %12 = arith.subf %8, %11 : vector<8x8xf32>
    %13 = math.exp %12 : vector<8x8xf32>
    %cst_6 = arith.constant dense<0.000000e+00> : vector<8xf32>
    %14 = vector.multi_reduction <add>, %13, %cst_6 [1] : vector<8x8xf32> to vector<8xf32>
    %15 = vector.shape_cast %14 : vector<8xf32> to vector<8x1xf32>
    %16 = tpu.reciprocal %15 {approx = true} : vector<8x1xf32> -> vector<8x1xf32>
    %17 = vector.broadcast %16 : vector<8x1xf32> to vector<8x8xf32>
    %18 = arith.mulf %13, %17 : vector<8x8xf32>
    %cst_7 = arith.constant dense<0.000000e+00> : vector<8x8xf32>
    %19 = tpu.matmul %18, %7, %cst_7 {dimension_numbers = #tpu.dot_dimension_numbers<[1], [0], [0], [1], [0, 0, 1, 1], [], []>} : vector<8x8xf32>, vector<8x8xf32>, vector<8x8xf32> -> vector<8x8xf32>
    %20 = vector.extract_strided_slice %4 {offsets = [0, 8], sizes = [8, 8], strides = [1, 1]} : vector<8x32xf32> to vector<8x8xf32>
    %21 = vector.extract_strided_slice %3 {offsets = [0, 40], sizes = [8, 8], strides = [1, 1]} : vector<8x96xf32> to vector<8x8xf32>
    %22 = vector.extract_strided_slice %3 {offsets = [0, 72], sizes = [8, 8], strides = [1, 1]} : vector<8x96xf32> to vector<8x8xf32>
    %cst_8 = arith.constant dense<0.000000e+00> : vector<8x8xf32>
    %23 = tpu.matmul %20, %21, %cst_8 {dimension_numbers = #tpu.dot_dimension_numbers<[1], [1], [0], [0], [0, 0, 1, 0], [], []>} : vector<8x8xf32>, vector<8x8xf32>, vector<8x8xf32> -> vector<8x8xf32>
    %cst_9 = arith.constant dense<0xFF800000> : vector<8xf32>
    %24 = vector.multi_reduction <maximumf>, %23, %cst_9 [1] : vector<8x8xf32> to vector<8xf32>
    %25 = vector.shape_cast %24 : vector<8xf32> to vector<8x1xf32>
    %26 = vector.broadcast %25 : vector<8x1xf32> to vector<8x8xf32>
    %27 = arith.subf %23, %26 : vector<8x8xf32>
    %28 = math.exp %27 : vector<8x8xf32>
    %cst_10 = arith.constant dense<0.000000e+00> : vector<8xf32>
    %29 = vector.multi_reduction <add>, %28, %cst_10 [1] : vector<8x8xf32> to vector<8xf32>
    %30 = vector.shape_cast %29 : vector<8xf32> to vector<8x1xf32>
    %31 = tpu.reciprocal %30 {approx = true} : vector<8x1xf32> -> vector<8x1xf32>
    %32 = vector.broadcast %31 : vector<8x1xf32> to vector<8x8xf32>
    %33 = arith.mulf %28, %32 : vector<8x8xf32>
    %cst_11 = arith.constant dense<0.000000e+00> : vector<8x8xf32>
    %34 = tpu.matmul %33, %22, %cst_11 {dimension_numbers = #tpu.dot_dimension_numbers<[1], [0], [0], [1], [0, 0, 1, 1], [], []>} : vector<8x8xf32>, vector<8x8xf32>, vector<8x8xf32> -> vector<8x8xf32>
    %35 = vector.extract_strided_slice %4 {offsets = [0, 16], sizes = [8, 8], strides = [1, 1]} : vector<8x32xf32> to vector<8x8xf32>
    %36 = vector.extract_strided_slice %3 {offsets = [0, 48], sizes = [8, 8], strides = [1, 1]} : vector<8x96xf32> to vector<8x8xf32>
    %37 = vector.extract_strided_slice %3 {offsets = [0, 80], sizes = [8, 8], strides = [1, 1]} : vector<8x96xf32> to vector<8x8xf32>
    %cst_12 = arith.constant dense<0.000000e+00> : vector<8x8xf32>
    %38 = tpu.matmul %35, %36, %cst_12 {dimension_numbers = #tpu.dot_dimension_numbers<[1], [1], [0], [0], [0, 0, 1, 0], [], []>} : vector<8x8xf32>, vector<8x8xf32>, vector<8x8xf32> -> vector<8x8xf32>
    %cst_13 = arith.constant dense<0xFF800000> : vector<8xf32>
    %39 = vector.multi_reduction <maximumf>, %38, %cst_13 [1] : vector<8x8xf32> to vector<8xf32>
    %40 = vector.shape_cast %39 : vector<8xf32> to vector<8x1xf32>
    %41 = vector.broadcast %40 : vector<8x1xf32> to vector<8x8xf32>
    %42 = arith.subf %38, %41 : vector<8x8xf32>
    %43 = math.exp %42 : vector<8x8xf32>
    %cst_14 = arith.constant dense<0.000000e+00> : vector<8xf32>
    %44 = vector.multi_reduction <add>, %43, %cst_14 [1] : vector<8x8xf32> to vector<8xf32>
    %45 = vector.shape_cast %44 : vector<8xf32> to vector<8x1xf32>
    %46 = tpu.reciprocal %45 {approx = true} : vector<8x1xf32> -> vector<8x1xf32>
    %47 = vector.broadcast %46 : vector<8x1xf32> to vector<8x8xf32>
    %48 = arith.mulf %43, %47 : vector<8x8xf32>
    %cst_15 = arith.constant dense<0.000000e+00> : vector<8x8xf32>
    %49 = tpu.matmul %48, %37, %cst_15 {dimension_numbers = #tpu.dot_dimension_numbers<[1], [0], [0], [1], [0, 0, 1, 1], [], []>} : vector<8x8xf32>, vector<8x8xf32>, vector<8x8xf32> -> vector<8x8xf32>
    %50 = vector.extract_strided_slice %4 {offsets = [0, 24], sizes = [8, 8], strides = [1, 1]} : vector<8x32xf32> to vector<8x8xf32>
    %51 = vector.extract_strided_slice %3 {offsets = [0, 56], sizes = [8, 8], strides = [1, 1]} : vector<8x96xf32> to vector<8x8xf32>
    %52 = vector.extract_strided_slice %3 {offsets = [0, 88], sizes = [8, 8], strides = [1, 1]} : vector<8x96xf32> to vector<8x8xf32>
    %cst_16 = arith.constant dense<0.000000e+00> : vector<8x8xf32>
    %53 = tpu.matmul %50, %51, %cst_16 {dimension_numbers = #tpu.dot_dimension_numbers<[1], [1], [0], [0], [0, 0, 1, 0], [], []>} : vector<8x8xf32>, vector<8x8xf32>, vector<8x8xf32> -> vector<8x8xf32>
    %cst_17 = arith.constant dense<0xFF800000> : vector<8xf32>
    %54 = vector.multi_reduction <maximumf>, %53, %cst_17 [1] : vector<8x8xf32> to vector<8xf32>
    %55 = vector.shape_cast %54 : vector<8xf32> to vector<8x1xf32>
    %56 = vector.broadcast %55 : vector<8x1xf32> to vector<8x8xf32>
    %57 = arith.subf %53, %56 : vector<8x8xf32>
    %58 = math.exp %57 : vector<8x8xf32>
    %cst_18 = arith.constant dense<0.000000e+00> : vector<8xf32>
    %59 = vector.multi_reduction <add>, %58, %cst_18 [1] : vector<8x8xf32> to vector<8xf32>
    %60 = vector.shape_cast %59 : vector<8xf32> to vector<8x1xf32>
    %61 = tpu.reciprocal %60 {approx = true} : vector<8x1xf32> -> vector<8x1xf32>
    %62 = vector.broadcast %61 : vector<8x1xf32> to vector<8x8xf32>
    %63 = arith.mulf %58, %62 : vector<8x8xf32>
    %cst_19 = arith.constant dense<0.000000e+00> : vector<8x8xf32>
    %64 = tpu.matmul %63, %52, %cst_19 {dimension_numbers = #tpu.dot_dimension_numbers<[1], [0], [0], [1], [0, 0, 1, 1], [], []>} : vector<8x8xf32>, vector<8x8xf32>, vector<8x8xf32> -> vector<8x8xf32>
    %65 = tpu.concatenate %19, %34, %49, %64 in 1 : vector<8x8xf32>, vector<8x8xf32>, vector<8x8xf32>, vector<8x8xf32> -> vector<8x32xf32>
    %c0_20 = arith.constant 0 : index
    %c0_21 = arith.constant 0 : index
    %66 = vector.load %arg7[%c0_20, %c0_21] : memref<8x32xf32, #tpu.memory_space<vmem>>, vector<8x32xf32>
    tpu.vector_store %arg7[%c0_20, %c0_21], %65 {strides = array<i32>} : memref<8x32xf32, #tpu.memory_space<vmem>>, vector<8x32xf32>,
    %c0_22 = arith.constant 0 : index
    %c0_23 = arith.constant 0 : index
    %67 = vector.load %arg7[%c0_22, %c0_23] : memref<8x32xf32, #tpu.memory_space<vmem>>, vector<8x32xf32>
    %c0_24 = arith.constant 0 : index
    %c0_25 = arith.constant 0 : index
    %68 = vector.load %arg4[%c0_24, %c0_25] : memref<32x32xf32, #tpu.memory_space<vmem>>, vector<32x32xf32>
    %cst_26 = arith.constant dense<0.000000e+00> : vector<8x32xf32>
    %69 = tpu.matmul %67, %68, %cst_26 {dimension_numbers = #tpu.dot_dimension_numbers<[1], [0], [0], [1], [0, 0, 1, 1], [], []>} : vector<8x32xf32>, vector<32x32xf32>, vector<8x32xf32> -> vector<8x32xf32>
    %c0_27 = arith.constant 0 : index
    %c0_28 = arith.constant 0 : index
    %70 = vector.load %arg5[%c0_27, %c0_28] : memref<1x32xf32, #tpu.memory_space<vmem>>, vector<1x32xf32>
    %71 = vector.broadcast %70 : vector<1x32xf32> to vector<8x32xf32>
    %72 = arith.addf %69, %71 : vector<8x32xf32>
    %c0_29 = arith.constant 0 : index
    %c0_30 = arith.constant 0 : index
    %c0_31 = arith.constant 0 : index
    %73 = vector.load %arg6[%c0_29, %c0_30, %c0_31] : memref<1x8x32xf32, #tpu.memory_space<vmem>>, vector<1x8x32xf32>
    %74 = vector.shape_cast %73 : vector<1x8x32xf32> to vector<8x32xf32>
    %75 = vector.shape_cast %72 : vector<8x32xf32> to vector<1x8x32xf32>
    tpu.vector_store %arg6[%c0_29, %c0_30, %c0_31], %75 {strides = array<i32>} : memref<1x8x32xf32, #tpu.memory_space<vmem>>, vector<1x8x32xf32>,
    return
  }
  func.func @transform_0(%arg0: i32, %arg1: i32) -> (i32, i32, i32) {
    %c0_i32 = arith.constant 0 : i32
    %c0_i32_0 = arith.constant 0 : i32
    %c0_i32_1 = arith.constant 0 : i32
    return %arg0, %c0_i32, %c0_i32_0 : i32, i32, i32
  }
  func.func @transform_1(%arg0: i32, %arg1: i32) -> (i32, i32) {
    %c0_i32 = arith.constant 0 : i32
    %c0_i32_0 = arith.constant 0 : i32
    %c0_i32_1 = arith.constant 0 : i32
    return %c0_i32, %c0_i32_0 : i32, i32
  }
  func.func @transform_2(%arg0: i32, %arg1: i32) -> (i32, i32) {
    %c0_i32 = arith.constant 0 : i32
    %c0_i32_0 = arith.constant 0 : i32
    %c0_i32_1 = arith.constant 0 : i32
    return %c0_i32, %c0_i32_0 : i32, i32
  }
  func.func @transform_3(%arg0: i32, %arg1: i32) -> (i32, i32) {
    %c0_i32 = arith.constant 0 : i32
    %c0_i32_0 = arith.constant 0 : i32
    %c0_i32_1 = arith.constant 0 : i32
    return %c0_i32, %c0_i32_0 : i32, i32
  }
  func.func @transform_4(%arg0: i32, %arg1: i32) -> (i32, i32, i32) {
    %c0_i32 = arith.constant 0 : i32
    %c0_i32_0 = arith.constant 0 : i32
    return %arg0, %arg1, %c0_i32 : i32, i32, i32
  }
}

</mosaic_0001>

<bundles_post_ra>
// kernel: tpu_custom_call.1
= control target key start
LH: loop header
LB: loop body
LE: loop exit
PB: predicated region body
PF: predicated region fallthrough
CT: control target
= control target key end

     0   :  { %9 = vsyncpa [#allocation4], 0  ;;  %s2015_s0 = inlined_call_operand.hbm [shape: f32[2,8,32], index: 0, kind: input, shape index: {}]   ;;  %s2016_s1 = inlined_call_operand.hbm [shape: f32[32,96], index: 1, kind: input, shape index: {}]   ;;  %s2017_s2 = inlined_call_operand.hbm [shape: f32[32,32], index: 2, kind: input, shape index: {}]   ;;  %s2018_s3 = inlined_call_operand.vmem [shape: f32[1,32], index: 3, kind: input, shape index: {}]   ;;  %s2019_s4 = inlined_call_operand.hbm [shape: f32[2,8,32], index: 4, kind: output, shape index: {}]  }
   0x1   :  { %11 = vsyncpa [#allocation4 + $0x1], 0 }
   0x2   :  { %12 = vsyncpa [#allocation7], 0 }
   0x3   :  { %13 = vsyncpa [#allocation5], 0 }
   0x4   :  { %15 = vsyncpa [#allocation5 + $0x1], 0  ;;  %s1684_s15 = smov 0   ;;  %s1686_s16 = smov 0  }
   0x5   :  { %s1688_s17 = smov 0   ;;  %s1690_s18 = smov 0  }
   0x6   :  { %s1692_s19 = smov 0   ;;  %s1694_s20 = smov 0  }
   0x7 LB: > { %s1212_s21 = sadd.s32 4294967295, %s1634_s20   ;;  %s1213_s22 = sadd.s32 4294967294, %s1634_s20   ;;  %s1634_s20 = sphi %s1694_s20, %s21_s20   ;;  %s1630_s19 = sphi %s1692_s19, %s2041_s19   ;;  %s1626_s18 = sphi %s1690_s18, %s2040_s18   ;;  %s1622_s17 = sphi %s1688_s17, %s2039_s17   ;;  %s1618_s16 = sphi %s1686_s16, %s2038_s16   ;;  %s1614_s15 = sphi %s1684_s15, %s2037_s15  }
   0x8   : > { %p53_p0 = scmp.ne.s32.totalorder %s1618_s16, %s1614_s15  ;;  %p1718_p1 = scmp.eq.s32.totalorder %s1212_s21, 0 }
   0x9   : > { %p1722_p2 = scmp.eq.s32.totalorder %s1212_s21, 1  ;;  %p148_p3 = scmp.eq.s32.totalorder %s1213_s22, 1 }
   0xa   : > { %s2024_s23 = scalar_select %p1718_p1, 1, 0 }
   0xb   : > { %p1728_p4 = por %p1718_p1, %p53_p0  ;;  %p1214_p5 = scmp.ge.s32.totalorder %s1634_s20, 1 }
   0xc   : > { %p1733_p6 = por %p148_p3, %p53_p0  ;;  %p155_p7 = scmp.lt.s32.totalorder %s1634_s20, 3 }
   0xd   : > { %s2026_s25 = scalar_select %p1728_p4, 1, 0 }
   0xe   : > { %s2027_s26 = scalar_select %p1733_p6, 1, 0 }
   0xf   : > { %p1738_p8 = pnand %p1214_p5, %p155_p7  ;;  %s1636_s28 = smov [#allocation6]  }
  0x10   : > { %s167_s29 = sshll.u32 %s1636_s28, 4  ;;  %s1637_s5 = smov [#allocation8]   ;;  %s1742_s29 = int_to_ptr.vmem [resolvable:$true] %s167_s29 }
  0x11   : > { %p1356_p9 = pneg %p1738_p8  ;;  %s180_s6 = sshll.u32 %s1637_s5, 4  ;;  %s1753_s6 = int_to_ptr.vmem [resolvable:$true] %s180_s6 }
  0x12   : > { %s1462_s9 = scalar_lea.hbm %s2016_s1, 512 }
  0x13   : > { %p1749_p11 = pnand %p1356_p9, %p1718_p1  ;;  %p1463_p12 = scmp.ne.s32.totalorder %s2016_s1, %s1462_s9 }
  0x14   : > { %p1469_p5 = scmp.lt.u32.totalorder %s1462_s9, %s2016_s1 }
  0x15   : > { %p1464_p13 = pneg %p1749_p11 }
  0x17   : > { %p1465_p0 = pnand %p1464_p13, %p1463_p12 }
  0x19   : > { %p1466_p3 = pneg %p1465_p0 }
  0x1b   : > { %p1471_p7 = pnand %p1469_p5, %p1466_p3 }
  0x1d   : > { %1474 = shalt.err (!%p1471_p7)
}
  0x1e   : > { %s1475_s14 = scalar_lea.vmem %s1742_s29, 512  ;;  %p1483_p1 = scmp.lt.s32.totalorder %s1742_s29, %s1742_s29 }
  0x1f   : > { %p1476_p9 = scmp.ne.s32.totalorder %s1742_s29, %s1475_s14  ;;  %p1484_p12 = scmp.lt.s32.totalorder %s1475_s14, %s1475_s14 }
  0x21   : > { %p1478_p10 = pnand %p1476_p9, %p1464_p13  ;;  %p1485_p0 = por %p1484_p12, %p1483_p1 }
  0x23   : > { %p1479_p6 = pneg %p1478_p10 }
  0x25   : > { %p1486_p4 = pnand %p1485_p0, %p1479_p6 }
  0x27   : > { %1489 = shalt.err (!%p1486_p4)
}
  0x28   : > { %s1638_s21 = smov 128   ;;  %s1639_s22 = smov 8  }
  0x29   : > { %1359 = dma.hbm_to_vmem [thread:$0]  (!%p1749_p11), %s2016_s1, 512, %s1742_s29, [#allocation7], %s1638_s21, %s1638_s21, %s1639_s22  }
  0x2a   : > { %s1490_s9 = scalar_lea.hbm %s2017_s2, 512 }
  0x2b   : > { %p1491_p1 = scmp.ne.s32.totalorder %s2017_s2, %s1490_s9  ;;  %p1497_p10 = scmp.lt.u32.totalorder %s1490_s9, %s2017_s2 }
  0x2d   : > { %p1493_p4 = pnand %p1491_p1, %p1464_p13 }
  0x2f   : > { %p1494_p6 = pneg %p1493_p4 }
  0x31   : > { %p1499_p3 = pnand %p1497_p10, %p1494_p6 }
  0x33   : > { %1502 = shalt.err (!%p1499_p3)
}
  0x34   : > { %s1503_s29 = scalar_lea.vmem %s1753_s6, 512  ;;  %p1511_p12 = scmp.lt.s32.totalorder %s1753_s6, %s1753_s6 }
  0x35   : > { %p1504_p5 = scmp.ne.s32.totalorder %s1753_s6, %s1503_s29  ;;  %p1512_p0 = scmp.lt.s32.totalorder %s1503_s29, %s1503_s29 }
  0x37   : > { %p1506_p7 = pnand %p1504_p5, %p1464_p13  ;;  %p1513_p1 = por %p1512_p0, %p1511_p12 }
  0x39   : > { %p1507_p9 = pneg %p1506_p7 }
  0x3b   : > { %p1514_p4 = pnand %p1513_p1, %p1507_p9 }
  0x3d   : > { %1517 = shalt.err (!%p1514_p4)
}
  0x3e   : > { %1362 = dma.hbm_to_vmem [thread:$0]  (!%p1749_p11), %s2017_s2, 512, %s1753_s6, [#allocation7], %s1638_s21, %s1638_s21, %s1639_s22  }
  0x3f   : > { %s33_s5 = sadd.s32 1, %s1630_s19  ;;  %s40_s7 = sadd.s32 1, %s1622_s17 }
  0x40   : > { %p35_p13 = scmp.ge.s32.totalorder %s33_s5, 2  ;;  %p47_p6 = scmp.ne.s32.totalorder %s1622_s17, %s1618_s16 }
  0x41   : > { %p48_p10 = scmp.eq.s32.totalorder %s1634_s20, 0  ;;  %p1373_p3 = scmp.lt.s32.totalorder %s1634_s20, 2 }
  0x42   : > { %s2043_s5 = smov (%p35_p13, %s33_s5), 0  ;;  %p1817_p7 = por %p1722_p2, %p47_p6 }
  0x43   : > { %p49_p5 = por %p48_p10, %p47_p6  ;;  %s37_s8 = ssub.s32 %s1630_s19, %s2043_s5 }
  0x44   : > { %s2030_s30 = scalar_select %p1817_p7, 1, 0 }
  0x45   : > { %s197_s9 = sand.u32 1, %s1622_s17   ;;  %p38_p9 = scmp.eq.s32.totalorder %s37_s8, 0 }
  0x46   : > { %s1218_s6 = sshll.u32 %s197_s9, 3  ;;  %s1219_s21 = sshll.u32 %s1630_s19, 7 }
  0x47   : > { %s1826_s22 = scalar_select %p38_p9, %s1622_s17, %s40_s7  }
  0x48   : > { %s1831_s12 = scalar_lea.hbm %s2015_s0, %s1219_s21  ;;  %s201_s24 = scalar_lea.vmem [#allocation3], %s1218_s6 }
  0x49   : > { %s208_s13 = sshll.u32 %s201_s24, 4  ;;  %p1835_p2 = pnand %p1373_p3, %p49_p5  ;;  %s1839_s13 = int_to_ptr.vmem [resolvable:$true] %s208_s13 }
  0x4a   : > { %s198_s14 = scalar_lea.sflag [#allocation4], %s197_s9  ;;  %s1518_s28 = scalar_lea.hbm %s1831_s12, 128 }
  0x4b   : > { %p1519_p11 = scmp.ne.s32.totalorder %s1831_s12, %s1518_s28  ;;  %p1520_p12 = pneg %p1835_p2 }
  0x4c   : > { %s1523_s6 = scalar_lea.hbm %s2015_s0, 256  ;;  %p1524_p4 = scmp.lt.u32.totalorder %s1831_s12, %s2015_s0 }
  0x4d   : > { %p1521_p0 = pnand %p1520_p12, %p1519_p11  ;;  %p1525_p13 = scmp.lt.u32.totalorder %s1523_s6, %s1518_s28 }
  0x4e   : > { %p1527_p10 = scmp.lt.u32.totalorder %s1518_s28, %s1831_s12 }
  0x4f   : > { %p1522_p1 = pneg %p1521_p0  ;;  %p1526_p6 = por %p1525_p13, %p1524_p4 }
  0x51   : > { %p1528_p3 = por %p1527_p10, %p1526_p6 }
  0x53   : > { %p1529_p5 = pnand %p1528_p3, %p1522_p1 }
  0x55   : > { %1532 = shalt.err (!%p1529_p5)
}
  0x56   : > { %s1533_s9 = scalar_lea.vmem %s1839_s13, 128  ;;  %s1640_s11 = smov [#allocation3]  }
  0x57   : > { %p1534_p9 = scmp.ne.s32.totalorder %s1839_s13, %s1533_s9  ;;  %s1538_s24 = sshll.u32 %s1640_s11, 4  ;;  %s1539_s24 = int_to_ptr.vmem [resolvable:$false] %s1538_s24 }
  0x58   : > { %s1540_s7 = scalar_lea.vmem %s1539_s24, 256  ;;  %p1541_p7 = scmp.lt.s32.totalorder %s1839_s13, %s1539_s24 }
  0x59   : > { %p1536_p11 = pnand %p1534_p9, %p1520_p12  ;;  %p1542_p4 = scmp.lt.s32.totalorder %s1540_s7, %s1533_s9 }
  0x5b   : > { %p1537_p0 = pneg %p1536_p11  ;;  %p1543_p13 = por %p1542_p4, %p1541_p7 }
  0x5d   : > { %p1544_p6 = pnand %p1543_p13, %p1537_p0 }
  0x5f   : > { %1547 = shalt.err (!%p1544_p6)
}
  0x60   : > { %1366 = dma.hbm_to_vmem [thread:$0]  (!%p1835_p2), %s1831_s12, 128, %s1839_s13, %s198_s14  }
  0x61   : > { %217 = sbr.rel (%p1738_p8) target bundleno = 2117 (0x845), region = 36  ;;  %s1869_s28 = sand.u32 (!%p1738_p8), 1, %s1618_s16  }
  0x62   : > { %s1221_s8 = sshll.u32 (!%p1738_p8), %s1869_s28, 3  ;;  %s220_s6 = scalar_lea.sflag (!%p1738_p8), [#allocation4], %s1869_s28 }
  0x63   : > { %s223_s21 = scalar_lea.vmem (!%p1738_p8), [#allocation3], %s1221_s8  ;;  %p2032_p7 = scmp.ne.s32.totalorder (!%p1738_p8), %s2026_s25, 0 }
  0x68   : > { %1601 = dma.done.wait (%p2032_p7), %s220_s6, 128  }
  0x69   : > { %1603 = vsyncadd (%p2032_p7), %s220_s6, 4294967168  ;;  %p2033_p2 = scmp.ne.s32.totalorder %s2024_s23, 0 }
  0x6b   : > { %1605 = dma.done.wait (%p2033_p2), [#allocation7], 1024  }
  0x6c   : > { %1607 = vsyncadd (%p2033_p2), [#allocation7], 4294966272  ;;  %v1641_v0 = vmov 0.0|0.0   ;;  %vm1642_vm0 = vmmov 0   ;;  %v1643_v1 = vmov 0.0   ;;  %v257_v2 = vld [vmem:[#allocation6] sm:$0xff] }
  0x6d   : > { %1332 = vmatprep.subr.bf16.mxu0 %v1641_v0  ;;  %1278 = vmatprep.mubr.msk.f32.mxu0 %vm1642_vm0, %v1643_v1  ;;  %v258_v3 = vld [vmem:[#allocation6 + $0x8] sm:$0xff]  ;;  %v259_v4 = vld [vmem:[#allocation6 + $0x10] sm:$0xff]  ;;  %v260_v6 = vld [vmem:[#allocation6 + $0x18] sm:$0xff]  ;;  %vm261_vm1 = vcmask 261120   ;;  %s1644_s23 = smov 64   ;;  %s1645_s25 = smov 96  }
  0x6e   : > { %1281 = vmatprep.subr.mxu1 %v1643_v1  ;;  %1283 = vmatprep.mubr.msk.f32.mxu1 %vm1642_vm0, %v1643_v1  ;;  %v1333_v5 = vpack.c.bf16 %v258_v3, %v257_v2  ;;  %v1336_v7 = vpack.c.bf16 %v260_v6, %v259_v4  ;;  %v256_v8 = vld [vmem:[%s223_s21] sm:$0xff]  ;;  %s1646_s27 = smov 88   ;;  %s1647_s12 = smov 120   ;;  %vm338_vm2 = vcmask 64512   ;;  %v1014_v6 = vld [vmem:[#allocation8] sm:$0xff]  ;;  %vm1008_vm3 = vcmask 130048  }
  0x6f   : > { %s1648_s13 = smov 80   ;;  %s1649_s29 = smov 72   ;;  %vm1010_vm4 = vcmask 195584  }
  0x70   : > { %1334 = vmatpush3.bf16.msra.mxu0 %v1333_v5  ;;  %s1650_s14 = smov 112   ;;  %s1651_s10 = smov 104  }
  0x71   : > { %1335 = vmatprep.subr.bf16.mxu0 %v1641_v0  ;;  %s1652_s9 = smov 56   ;;  %s1653_s11 = smov 48  }
  0x72   : > { %s1654_s24 = smov 40   ;;  %s1655_s7 = smov 8  }
  0x73   : > { %s1656_s6 = smov 16   ;;  %s1657_s21 = smov 24  }
  0x74   : > { %1337 = vmatpush3.bf16.msra.mxu0 %v1336_v7  ;;  %v1015_v7 = vld [vmem:[#allocation8 + $0x8] sm:$0xff]  ;;  %p2034_p12 = scmp.ne.s32.totalorder %s2030_s30, 0 }
  0x75   : > { %1301 = vmatprep.subr.mxu0 %v1643_v1 }
  0x77   : > { %1279 = vmatmul.mubr.msk.f32.vlgmr.msra.gmra.mrb[0].mxu0 %vm261_vm1, %v256_v8  ;;  %v1339_v8 = vpack.c.bf16 %v1015_v7, %v1014_v6 }
  0x78   : > { %1303 = vmatprep.mubr.msk.f32.mxu0 %vm1642_vm0, %v1643_v1 }
 0x14a   : > { %v1894_v9 = vpop.f32.mrb[0].mxu0 }
 0x14b   : > { %424 = vrot.lane.b32.xlu1 %v1894_v9, %s1644_s23  ;;  %336 = vrot.lane.b32.xlu0 %v1894_v9, %s1645_s25  ;;  %v1280_v10 = vpop.f32.mrb[1].mxu0 }
 0x14c   : > { %v1017_v10 = vld [vmem:[#allocation8 + $0x18] sm:$0xff] }
 0x14f   : > { %502 = vrot.lane.b32.xlu1 %v1894_v9, %s1646_s27  ;;  %s1241_s27 = sshll.u32 %s1626_s18, 7 }
 0x153   : > { %500 = vrot.lane.b32.xlu1 %v1894_v9, %s1647_s12  ;;  %s255_s12 = scalar_lea.vmem [#allocation9], %s1221_s8  ;;  %s1658_s8 = smov [#allocation9]  }
 0x157   : > { %667 = vrot.lane.b32.xlu1 %v1894_v9, %s1648_s13  ;;  %s1114_s13 = sshll.u32 %s255_s12, 4  ;;  %s1967_s13 = int_to_ptr.vmem [resolvable:$true] %s1114_s13 }
 0x158   : > { %s1548_s18 = scalar_lea.vmem %s1967_s13, 128 }
 0x159   : > { %p1549_p8 = scmp.ne.s32.totalorder %s1967_s13, %s1548_s18 }
 0x15b   : > { %p1550_p1 = pnand %p1549_p8, %p2034_p12 }
 0x15d   : > { %p1551_p10 = pneg %p1550_p1 }
 0x1bd   : > { %v425_v11 = vpop.permute.xlu1 %424  ;;  %v337_v12 = vpop.permute.xlu0 %336 }
 0x1be   : > { %1282 = vmatpush3.xpose.msk.msra.mxu1 %vm338_vm2, %v337_v12 }
 0x1bf   : > { %1286 = vmatprep.subr.mxu1 %v1643_v1 }
 0x1c1   : > { %v503_v13 = vpop.permute.xlu1 %502  ;;  %1284 = vmatmul.mubr.msk.f32.vlgmr.msra.gmra.mrb[0].mxu1 %vm338_vm2, %v1894_v9 }
 0x1c2   : > { %1287 = vmatpush3.msra.mxu1 %v425_v11  ;;  %1288 = vmatprep.mubr.msk.f32.mxu1 %vm1642_vm0, %v1643_v1 }
 0x1c3   : > { %1291 = vmatprep.subr.mxu1 %v1643_v1 }
 0x1c5   : > { %v501_v14 = vpop.permute.xlu1 %500 }
 0x1c9   : > { %v668_v15 = vpop.permute.xlu1 %667 }
 0x1ca   : > { %1302 = vmatpush3.xpose.msk.msra.mxu0 %vm338_vm2, %v668_v15 }
 0x1cb   : > { %1311 = vmatprep.subr.mxu0 %v1643_v1 }
 0x294   : > { %v409_v16 = vpop.f32.mrb[0].mxu1 }
 0x295   : > { %v1285_v17 = vpop.f32.mrb[1].mxu1  ;;  %v413_v18 = vsel %vm338_vm2, %v409_v16, -inf }
 0x296   : > { %414 = vmax.xlane.f32.xlu0 %v413_v18 }
 0x2ac   : > { %832 = vrot.lane.b32.xlu0 %v1894_v9, %s1649_s29 }
 0x323   : > { %v415_v19 = vpop.xlane.xlu0 %414 }
 0x324   : > { %v416_v20 = vsub.f32 %v409_v16, %v415_v19 }
 0x326   : > { %v417_v21 = vmul.f32 1.442695, %v416_v20 }
 0x327   : > { %v833_v26 = vpop.permute.xlu0 %832 }
 0x328   : > { %1446 = vpow2.f32 %v417_v21 }
 0x332   : > { %v1447_v22 = vpop.eup %1446 }
 0x333   : > { %v419_v23 = vsel %vm338_vm2, %v1447_v22, 0.0 }
 0x334   : > { %420 = vadd.xlane.f32.xlu1 %v419_v23  ;;  %v1238_v23 = vld [vmem:[%s2018_s3] ss:$0 sm:$0xff] }
 0x345   : > { %665 = vrot.lane.b32.xlu1 %v1894_v9, %s1650_s14 }
 0x349   : > { %830 = vrot.lane.b32.xlu1 %v1894_v9, %s1651_s10  ;;  %s1965_s10 = scalar_lea.hbm %s2019_s4, %s1241_s27 }
 0x3c1   : > { %v421_v24 = vpop.xlane.xlu1 %420 }
 0x3c2   : > { %1448 = vrcp.f32 %v421_v24 }
 0x3c5   : > { %v666_v25 = vpop.permute.xlu1 %665 }
 0x3c6   : > { %1304 = vmatmul.mubr.msk.f32.vlgmr.msra.gmra.mrb[2].mxu0 %vm338_vm2, %v666_v25 }
 0x3c7   : > { %1312 = vmatpush3.xpose.msk.msra.mxu0 %vm338_vm2, %v833_v26  ;;  %1313 = vmatprep.mubr.msk.f32.mxu0 %vm1642_vm0, %v1643_v1 }
 0x3c8   : > { %1338 = vmatprep.subr.bf16.mxu0 %v1641_v0 }
 0x3c9   : > { %v831_v27 = vpop.permute.xlu1 %830 }
 0x3ca   : > { %1314 = vmatmul.mubr.msk.f32.vlgmr.msra.gmra.mrb[4].mxu0 %vm338_vm2, %v831_v27 }
 0x3cb   : > { %1329 = vmatprep.mubr.msk.f32.mxu0 %vm1642_vm0, %v1643_v1  ;;  %1340 = vmatpush3.bf16.msra.mxu0 %v1339_v8 }
 0x3cc   : > { %v1449_v28 = vpop.eup %1448  ;;  %1341 = vmatprep.subr.bf16.mxu0 %v1641_v0 }
 0x3cd   : > { %v423_v29 = vmul.f32 %v1449_v28, %v1447_v22 }
 0x3cf   : > { %1289 = vmatmul.mubr.msk.f32.vlgmr.msra.gmra.mrb[2].mxu1 %vm338_vm2, %v423_v29 }
 0x3d0   : > { %1292 = vmatpush3.xpose.msk.msra.mxu1 %vm338_vm2, %v503_v13  ;;  %1293 = vmatprep.mubr.msk.f32.mxu1 %vm1642_vm0, %v1643_v1 }
 0x3d1   : > { %1296 = vmatprep.subr.mxu1 %v1643_v1 }
 0x3d3   : > { %1294 = vmatmul.mubr.msk.f32.vlgmr.msra.gmra.mrb[4].mxu1 %vm338_vm2, %v501_v14 }
 0x3d4   : > { %1298 = vmatprep.mubr.msk.f32.mxu1 %vm1642_vm0, %v1643_v1 }
 0x499   : > { %v739_v30 = vpop.f32.mrb[2].mxu0 }
 0x49a   : > { %v1305_v31 = vpop.f32.mrb[3].mxu0  ;;  %v743_v32 = vsel %vm338_vm2, %v739_v30, -inf }
 0x49b   : > { %744 = vmax.xlane.f32.xlu0 %v743_v32 }
 0x49d   : > { %v904_v33 = vpop.f32.mrb[4].mxu0 }
 0x49e   : > { %v1315_v34 = vpop.f32.mrb[5].mxu0  ;;  %v908_v40 = vsel %vm338_vm2, %v904_v33, -inf }
 0x4a2   : > { %v1932_v35 = vpop.f32.mrb[2].mxu1 }
 0x4a3   : > { %v1290_v36 = vpop.f32.mrb[3].mxu1 }
 0x4a6   : > { %v574_v37 = vpop.f32.mrb[4].mxu1 }
 0x4a7   : > { %v1295_v38 = vpop.f32.mrb[5].mxu1  ;;  %v578_v39 = vsel %vm338_vm2, %v574_v37, -inf }
 0x4a8   : > { %579 = vmax.xlane.f32.xlu1 %v578_v39 }
 0x4ac   : > { %909 = vmax.xlane.f32.xlu1 %v908_v40 }
 0x528   : > { %v745_v41 = vpop.xlane.xlu0 %744 }
 0x529   : > { %v746_v42 = vsub.f32 %v739_v30, %v745_v41 }
 0x52b   : > { %v747_v43 = vmul.f32 1.442695, %v746_v42 }
 0x52d   : > { %1450 = vpow2.f32 %v747_v43 }
 0x535   : > { %v580_v44 = vpop.xlane.xlu1 %579 }
 0x536   : > { %v581_v52 = vsub.f32 %v574_v37, %v580_v44 }
 0x537   : > { %v1451_v45 = vpop.eup %1450 }
 0x538   : > { %v749_v46 = vsel %vm338_vm2, %v1451_v45, 0.0  ;;  %v582_v53 = vmul.f32 1.442695, %v581_v52 }
 0x539   : > { %750 = vadd.xlane.f32.xlu1 %v749_v46  ;;  %v910_v47 = vpop.xlane.xlu1 %909 }
 0x53a   : > { %v911_v48 = vsub.f32 %v904_v33, %v910_v47 }
 0x53c   : > { %v912_v49 = vmul.f32 1.442695, %v911_v48 }
 0x53e   : > { %1452 = vpow2.f32 %v912_v49 }
 0x53f   : > { %1454 = vpow2.f32 %v582_v53 }
 0x548   : > { %v1453_v50 = vpop.eup %1452 }
 0x549   : > { %v914_v51 = vsel %vm338_vm2, %v1453_v50, 0.0  ;;  %v1455_v54 = vpop.eup %1454 }
 0x54a   : > { %589 = vrot.lane.b32.xlu1 %v1894_v9, %s1652_s9  ;;  %915 = vadd.xlane.f32.xlu0 %v914_v51  ;;  %v584_v55 = vsel %vm338_vm2, %v1455_v54, 0.0  ;;  %s1100_s9 = scalar_lea.sflag [#allocation5], %s1869_s28 }
 0x560   : > { %754 = vrot.lane.b32.xlu0 %v1894_v9, %s1653_s11  ;;  %s1552_s11 = sshll.u32 %s1658_s8, 4  ;;  %s1553_s11 = int_to_ptr.vmem [resolvable:$false] %s1552_s11 }
 0x561   : > { %p1555_p3 = scmp.lt.s32.totalorder %s1967_s13, %s1553_s11 }
 0x56e   : > { %585 = vadd.xlane.f32.xlu1 %v584_v55 }
 0x57f   : > { %919 = vrot.lane.b32.xlu1 %v1894_v9, %s1654_s24  ;;  %v1016_v9 = vld [vmem:[#allocation8 + $0x10] sm:$0xff]  ;;  %s1554_s24 = scalar_lea.vmem %s1553_s11, 256 }
 0x580   : > { %v1342_v11 = vpack.c.bf16 %v1017_v10, %v1016_v9  ;;  %p1556_p5 = scmp.lt.s32.totalorder %s1554_s24, %s1548_s18 }
 0x582   : > { %1343 = vmatpush3.bf16.msra.mxu0 %v1342_v11  ;;  %p1557_p9 = por %p1556_p5, %p1555_p3 }
 0x584   : > { %p1558_p11 = pnand %p1557_p9, %p1551_p10 }
 0x5c6   : > { %v751_v56 = vpop.xlane.xlu1 %750 }
 0x5ca   : > { %v590_v57 = vpop.permute.xlu1 %589 }
 0x5cb   : > { %1297 = vmatpush3.msra.mxu1 %v590_v57 }
 0x5cc   : > { %1306 = vmatprep.subr.mxu1 %v1643_v1 }
 0x5d7   : > { %v916_v59 = vpop.xlane.xlu0 %915 }
 0x5db   : > { %v755_v63 = vpop.permute.xlu0 %754 }
 0x5fb   : > { %v586_v58 = vpop.xlane.xlu1 %585 }
 0x5fc   : > { %1456 = vrcp.f32 %v586_v58 }
 0x5fd   : > { %1458 = vrcp.f32 %v751_v56 }
 0x5fe   : > { %1460 = vrcp.f32 %v916_v59 }
 0x5ff   : > { %v920_v4 = vpop.permute.xlu1 %919 }
 0x606   : > { %v1457_v60 = vpop.eup %1456 }
 0x607   : > { %v588_v61 = vmul.f32 %v1457_v60, %v1455_v54  ;;  %v1459_v62 = vpop.eup %1458 }
 0x608   : > { %v753_v2 = vmul.f32 %v1459_v62, %v1451_v45  ;;  %v1461_v3 = vpop.eup %1460 }
 0x609   : > { %1299 = vmatmul.mubr.msk.f32.vlgmr.msra.gmra.mrb[6].mxu1 %vm338_vm2, %v588_v61  ;;  %v918_v5 = vmul.f32 %v1461_v3, %v1453_v50 }
 0x60a   : > { %1307 = vmatpush3.msra.mxu1 %v755_v63  ;;  %1308 = vmatprep.mubr.msk.f32.mxu1 %vm1642_vm0, %v1643_v1 }
 0x60b   : > { %1316 = vmatprep.subr.mxu1 %v1643_v1 }
 0x60d   : > { %1309 = vmatmul.mubr.msk.f32.vlgmr.msra.gmra.mrb[8].mxu1 %vm338_vm2, %v753_v2 }
 0x60e   : > { %1317 = vmatpush3.msra.mxu1 %v920_v4  ;;  %1318 = vmatprep.mubr.msk.f32.mxu1 %vm1642_vm0, %v1643_v1 }
 0x611   : > { %1319 = vmatmul.mubr.msk.f32.vlgmr.msra.gmra.mrb[10].mxu1 %vm338_vm2, %v918_v5 }
 0x6dc   : > { %v661_v12 = vpop.f32.mrb[6].mxu1 }
 0x6dd   : > { %996 = vrot.lane.b32.xlu1 %v661_v12, %s1655_s7  ;;  %v1300_v13 = vpop.f32.mrb[7].mxu1 }
 0x6e0   : > { %v826_v14 = vpop.f32.mrb[8].mxu1 }
 0x6e1   : > { %1000 = vrot.lane.b32.xlu0 %v826_v14, %s1656_s6  ;;  %v1310_v1 = vpop.f32.mrb[9].mxu1 }
 0x6e4   : > { %v991_v15 = vpop.f32.mrb[10].mxu1 }
 0x6e5   : > { %1004 = vrot.lane.b32.xlu1 %v991_v15, %s1657_s21  ;;  %v1320_v16 = vpop.f32.mrb[11].mxu1 }
 0x74f   : > { %v997_v17 = vpop.permute.xlu1 %996 }
 0x750   : > { %v1007_v0 = vsel %vm338_vm2, %v1932_v35, %v997_v17 }
 0x753   : > { %v1001_v18 = vpop.permute.xlu0 %1000 }
 0x754   : > { %v1009_v19 = vsel %vm1008_vm3, %v1007_v0, %v1001_v18 }
 0x757   : > { %v1005_v20 = vpop.permute.xlu1 %1004 }
 0x758   : > { %v1011_v21 = vsel %vm1010_vm4, %v1009_v19, %v1005_v20 }
 0x759   : > { %1012 = vst.msk [vmem:[#allocation2] sm:$0xff] %vm261_vm1, %v1011_v21 }
 0x760   : > { %v1013_v22 = vld [vmem:[#allocation2] sm:$0xff] }
 0x761   : > { %1330 = vmatmul.mubr.msk.f32.vlgmr.msra.gmra.mrb[6].mxu0 %vm261_vm1, %v1013_v22 }
 0x834   : > { %v1094_v24 = vpop.f32.mrb[6].mxu0 }
 0x835   : > { %v1095_v25 = vadd.f32 %v1238_v23, %v1094_v24  ;;  %v1331_v26 = vpop.f32.mrb[7].mxu0 }
 0x837   : > { %1098 = vst.msk [vmem:[%s255_s12] sm:$0xff] %vm261_vm1, %v1095_v25 }
 0x838   : > { %1561 = shalt.err (!%p1558_p11)
}
 0x839   : > { %s1562_s28 = scalar_lea.hbm %s1965_s10, 128  ;;  %s1566_s21 = scalar_lea.hbm %s2019_s4, 256 }
 0x83a   : > { %p1563_p0 = scmp.ne.s32.totalorder %s1965_s10, %s1562_s28  ;;  %p1567_p6 = scmp.lt.u32.totalorder %s1965_s10, %s2019_s4 }
 0x83b   : > { %p1568_p7 = scmp.lt.u32.totalorder %s1566_s21, %s1562_s28  ;;  %p1570_p8 = scmp.lt.u32.totalorder %s1562_s28, %s1965_s10 }
 0x83c   : > { %p1564_p4 = pnand %p1563_p0, %p2034_p12 }
 0x83d   : > { %p1569_p2 = por %p1568_p7, %p1567_p6 }
 0x83e   : > { %p1565_p13 = pneg %p1564_p4 }
 0x83f   : > { %p1571_p1 = por %p1570_p8, %p1569_p2 }
 0x841   : > { %p1572_p10 = pnand %p1571_p1, %p1565_p13 }
 0x843   : > { %1575 = shalt.err (!%p1572_p10)
}
 0x844   : > { %1354 = dma.vmem_to_hbm [thread:$0]  (%p2034_p12), %s1967_s13, 128, %s1965_s10, %s1100_s9  }
 0x845 PF: > { %s1126_s27 = sand.u32 1, %s1614_s15   ;;  %p2035_p3 = scmp.ne.s32.totalorder %s2027_s26, 0 }
 0x846   : > { %p2036_p5 = scmp.ge.s32.totalorder %s1634_s20, 2  ;;  %s1127_s12 = scalar_lea.sflag [#allocation5], %s1126_s27 }
 0x848   : > { %p1368_p9 = pnand %p2036_p5, %p2035_p3 }
 0x84a   : > { %1609 = dma.done.wait (!%p1368_p9), %s1127_s12, 128  }
 0x84b   : > { %1611 = vsyncadd (!%p1368_p9), %s1127_s12, 4294967168  ;;  %s21_s20 = sadd.s32 1, %s1634_s20   ;;  %s2037_s15 = smov %s1618_s16 }
 0x84c   : > { %p18_p11 = scmp.ge.s32.totalorder %s21_s20, 4   ;;  %s2038_s16 = smov %s1622_s17 }
 0x84d   : > { %s2039_s17 = smov %s1826_s22  ;;  %s2040_s18 = smov %s1630_s19 }
 0x84e   : > { %s2041_s19 = smov %s2043_s5  ;;  %20 = sbr.rel (!%p18_p11) target bundleno = 7 (0x7), region = 89 }
 0x855   :  { %1132 = vsyncpa [#allocation4], 1 }
 0x856   :  { %1134 = vsyncpa [#allocation4 + $0x1], 1 }
 0x857   :  { %1135 = vsyncpa [#allocation7], 1 }
 0x858   :  { %1136 = vsyncpa [#allocation5], 1 }
 0x859   :  { %1138 = vsyncpa [#allocation5 + $0x1], 1 }

</bundles_post_ra>
